<compile_context>
chip_gen: v7x
topology: tpu7x:2x2x1
jax: 0.10.0
libtpu: 0.0.40
codegen_flags: <defaults>
</compile_context>

<pallas_src>
import functools

import jax
import jax.numpy as jnp
from jax.experimental import pallas as pl
from jax.experimental.pallas import tpu as pltpu


def _round_up(v, m):
    return ((v + m - 1) // m) * m


def gaussian_encoder_kernel(x_ref, w1_ref, b1_ref, w2_ref, b2_ref,
                            w3_ref, b3_ref, mean_ref, std_ref, *, m_pad):
    """Fused MLP encoder + Gaussian parameterization for one batch tile.

    x_ref:            (TB, D_pad)        matmul dtype (bf16 or f32)
    w1/b1:            (D_pad, H1_pad)    / (1, H1_pad)
    w2/b2:            (H1_pad, H2_pad)   / (1, H2_pad)
    w3/b3:            (H2_pad, 2*M_pad)  / (1, 2*M_pad)   fused mean|log_std head
    mean_ref/std_ref: (TB, M_pad)        f32
    """
    x = x_ref[...]

    # Layer 1: (TB, D_pad) @ (D_pad, H1_pad) -> f32 acc, bias + ReLU in f32.
    h1 = jnp.dot(x, w1_ref[...], preferred_element_type=jnp.float32) + b1_ref[...]
    h1 = jnp.maximum(h1, 0.0)

    # Layer 2: cast activation back to the matmul dtype for the MXU.
    h2 = jnp.dot(h1.astype(w2_ref.dtype), w2_ref[...],
                 preferred_element_type=jnp.float32) + b2_ref[...]
    h2 = jnp.maximum(h2, 0.0)

    # Fused output head: one (TB, 2*M_pad) matmul; split at a 128-aligned lane
    # boundary (whole-vreg selection, no cross-lane movement).
    out = jnp.dot(h2.astype(w3_ref.dtype), w3_ref[...],
                  preferred_element_type=jnp.float32) + b3_ref[...]

    mean_ref[...] = out[:, :m_pad]
    # scale = exp(raw_std), matching torch.exp(std) in the reference module.
    std_ref[...] = jnp.exp(out[:, m_pad:])


def gaussian_encoder_forward(x, params, *, use_bf16=True, tb_max=256):
    """Runs the fused encoder; returns (mean, std) of the latent Gaussian.

    x: (B, F1, F2) float32.  params: (w1, b1, w2, b2, w3, b3).
    """
    w1, b1, w2, b2, w3, b3 = params
    B = x.shape[0]
    D = x.shape[1] * x.shape[2]
    x_flat = x.reshape(B, D).astype(jnp.float32)   # glue: flatten in plain JAX

    H1 = w1.shape[1]
    H2 = w2.shape[1]
    M = w3.shape[1] // 2

    # --- lane-align every matmul dim (multiples of 128); zero padding is inert.
    D_pad = _round_up(D, 128)
    H1_pad = _round_up(H1, 128)
    H2_pad = _round_up(H2, 128)
    M_pad = _round_up(M, 128)

    # --- batch tiling: TB multiple of 8, capped at tb_max; pad B up to a multiple.
    TB = min(tb_max, max(8, _round_up(B, 8)))
    B_pad = _round_up(B, TB)
    grid = (pl.cdiv(B_pad, TB),)

    x_flat = jnp.pad(x_flat, ((0, B_pad - B), (0, D_pad - D)))

    w1_p = jnp.pad(w1, ((0, D_pad - D), (0, H1_pad - H1)))
    b1_p = jnp.pad(b1, ((0, 0), (0, H1_pad - H1)))
    w2_p = jnp.pad(w2, ((0, H1_pad - H1), (0, H2_pad - H2)))
    b2_p = jnp.pad(b2, ((0, 0), (0, H2_pad - H2)))

    # Fused output head laid out as [mean | log_std], each padded to M_pad lanes.
    w_mean = jnp.pad(w3[:, :M], ((0, H2_pad - H2), (0, M_pad - M)))
    w_lstd = jnp.pad(w3[:, M:], ((0, H2_pad - H2), (0, M_pad - M)))
    w3_p = jnp.concatenate([w_mean, w_lstd], axis=1)        # (H2_pad, 2*M_pad)
    b_mean = jnp.pad(b3[:, :M], ((0, 0), (0, M_pad - M)))
    b_lstd = jnp.pad(b3[:, M:], ((0, 0), (0, M_pad - M)))
    b3_p = jnp.concatenate([b_mean, b_lstd], axis=1)         # (1, 2*M_pad)

    # --- bf16 MXU operands, f32 accumulation; biases stay f32.
    mm_dtype = jnp.bfloat16 if use_bf16 else jnp.float32
    x_mm = x_flat.astype(mm_dtype)
    w1_mm = w1_p.astype(mm_dtype)
    w2_mm = w2_p.astype(mm_dtype)
    w3_mm = w3_p.astype(mm_dtype)
    b1_f = b1_p.astype(jnp.float32)
    b2_f = b2_p.astype(jnp.float32)
    b3_f = b3_p.astype(jnp.float32)

    # --- BlockSpecs: x / outputs tiled along the batch, params constant.
    const = lambda shape: pl.BlockSpec(shape, lambda i: (0,) * len(shape))
    x_spec = pl.BlockSpec((TB, D_pad), lambda i: (i, 0))
    out_spec = pl.BlockSpec((TB, M_pad), lambda i: (i, 0))

    # --- explicit VMEM budget (double-buffered x + outputs + resident params).
    mm_isize = jnp.dtype(mm_dtype).itemsize
    vmem_est = (
        2 * TB * D_pad * mm_isize                                   # x tiles (2-deep)
        + 2 * 2 * TB * M_pad * 4                                    # two output tiles (2-deep)
        + 2 * (D_pad * H1_pad + H1_pad * H2_pad
               + H2_pad * 2 * M_pad) * mm_isize                     # weights (2-deep)
        + 2 * (H1_pad + H2_pad + 2 * M_pad) * 4                     # biases (2-deep)
        + 4 * TB * max(H1_pad, H2_pad, 2 * M_pad) * 4               # intermediates headroom
    )
    vmem_limit = int(min(max(2 * vmem_est, 4 * 1024 * 1024), 64 * 1024 * 1024))

    kernel = functools.partial(gaussian_encoder_kernel, m_pad=M_pad)

    mean, std = pl.pallas_call(
        kernel,
        grid=grid,
        in_specs=[
            x_spec,
            const(w1_mm.shape), const(b1_f.shape),
            const(w2_mm.shape), const(b2_f.shape),
            const(w3_mm.shape), const(b3_f.shape),
        ],
        out_specs=(out_spec, out_spec),
        out_shape=(
            jax.ShapeDtypeStruct((B_pad, M_pad), jnp.float32),
            jax.ShapeDtypeStruct((B_pad, M_pad), jnp.float32),
        ),
        compiler_params=pltpu.CompilerParams(
            dimension_semantics=("parallel",),
            vmem_limit_bytes=vmem_limit,
        ),
    )(x_mm, w1_mm, b1_f, w2_mm, b2_f, w3_mm, b3_f)

    return mean[:B, :M], std[:B, :M]


def init_params(key, d_in, h1, h2, latent_m):
    """Deterministic PyTorch-Linear-style init (uniform +-1/sqrt(fan_in))."""
    ks = jax.random.split(key, 6)

    def lin(kw, kb, fan_in, fan_out):
        bound = 1.0 / jnp.sqrt(fan_in)
        w = jax.random.uniform(kw, (fan_in, fan_out), jnp.float32, -bound, bound)
        b = jax.random.uniform(kb, (1, fan_out), jnp.float32, -bound, bound)
        return w, b

    w1, b1 = lin(ks[0], ks[1], d_in, h1)
    w2, b2 = lin(ks[2], ks[3], h1, h2)
    w3, b3 = lin(ks[4], ks[5], h2, 2 * latent_m)
    return (w1, b1, w2, b2, w3, b3)


def reference_forward(x, params, *, use_bf16=True):
    """Pure-JAX reference with the same bf16-operand / f32-accumulate math."""
    w1, b1, w2, b2, w3, b3 = params
    B = x.shape[0]
    M = w3.shape[1] // 2
    mm = jnp.bfloat16 if use_bf16 else jnp.float32

    def mmul(a, w):
        return jnp.dot(a.astype(mm), w.astype(mm),
                       preferred_element_type=jnp.float32)

    xf = x.reshape(B, -1)
    h = jnp.maximum(mmul(xf, w1) + b1, 0.0)
    h = jnp.maximum(mmul(h, w2) + b2, 0.0)
    mean = mmul(h, w3[:, :M]) + b3[:, :M]
    log_std = mmul(h, w3[:, M:]) + b3[:, M:]
    return mean, jnp.exp(log_std)


if __name__ == "__main__":
    key = jax.random.PRNGKey(0)
    k_x, k_p = jax.random.split(key)

    B, F1, F2 = 2, 16, 16          # (batch, feature_dim1, feature_dim2)
    H1, H2, M = 32, 32, 8          # hidden sizes, latent dim M (output is 2M)

    x = jax.random.normal(k_x, (B, F1, F2), dtype=jnp.float32)
    params = init_params(k_p, F1 * F2, H1, H2, M)

    mean, std = gaussian_encoder_forward(x, params, use_bf16=True)
    jax.block_until_ready((mean, std))

    # Reference check (same bf16-operand math, so tolerances stay tight).
    mean_ref, std_ref = reference_forward(x, params, use_bf16=True)
    assert mean.shape == (B, M) and std.shape == (B, M)
    assert jnp.allclose(mean, mean_ref, atol=1e-3, rtol=1e-3)
    assert jnp.allclose(std, std_ref, atol=1e-3, rtol=1e-3)
    assert bool(jnp.all(std > 0))          # valid Normal scale
    assert bool(jnp.all(jnp.isfinite(mean))) and bool(jnp.all(jnp.isfinite(std)))

    # TODO(synk): the td.Independent(td.Normal(...)) distribution object is
    # returned as its (mean, std) parameters; downstream log_prob/rsample are
    # plain JAX ops outside the kernel.

    print("KERNEL_OK")
</pallas_src>

<mosaic_0001>
module attributes {stable_mosaic.version = 11 : i64} {
  func.func @gaussian_encoder_kernel(%arg0: i32, %arg1: memref<8x256xbf16, #tpu.memory_space<vmem>>, %arg2: memref<256x128xbf16, #tpu.memory_space<vmem>>, %arg3: memref<1x128xf32, #tpu.memory_space<vmem>>, %arg4: memref<128x128xbf16, #tpu.memory_space<vmem>>, %arg5: memref<1x128xf32, #tpu.memory_space<vmem>>, %arg6: memref<128x256xbf16, #tpu.memory_space<vmem>>, %arg7: memref<1x256xf32, #tpu.memory_space<vmem>>, %arg8: memref<8x128xf32, #tpu.memory_space<vmem>>, %arg9: memref<8x128xf32, #tpu.memory_space<vmem>>) attributes {dimension_semantics = [#tpu.dimension_semantics<parallel>], iteration_bounds = array<i64: 1>, scalar_prefetch = 0 : i64, scratch_operands = 0 : i64, tpu.core_type = #tpu.core_type<tc>, window_params = [{transform_indices = @transform_0, window_bounds = array<i64: 8, 256>}, {pipeline_mode = #tpu.pipeline_mode<synchronous>, transform_indices = @transform_1, window_bounds = array<i64: 256, 128>}, {pipeline_mode = #tpu.pipeline_mode<synchronous>, transform_indices = @transform_2, window_bounds = array<i64: 1, 128>}, {pipeline_mode = #tpu.pipeline_mode<synchronous>, transform_indices = @transform_3, window_bounds = array<i64: 128, 128>}, {pipeline_mode = #tpu.pipeline_mode<synchronous>, transform_indices = @transform_4, window_bounds = array<i64: 1, 128>}, {pipeline_mode = #tpu.pipeline_mode<synchronous>, transform_indices = @transform_5, window_bounds = array<i64: 128, 256>}, {pipeline_mode = #tpu.pipeline_mode<synchronous>, transform_indices = @transform_6, window_bounds = array<i64: 1, 256>}, {transform_indices = @transform_7, window_bounds = array<i64: 8, 128>}, {transform_indices = @transform_8, window_bounds = array<i64: 8, 128>}]} {
    %c0 = arith.constant 0 : index
    %c0_0 = arith.constant 0 : index
    %0 = vector.load %arg1[%c0, %c0_0] : memref<8x256xbf16, #tpu.memory_space<vmem>>, vector<8x256xbf16>
    %c0_1 = arith.constant 0 : index
    %c0_2 = arith.constant 0 : index
    %1 = vector.load %arg2[%c0_1, %c0_2] : memref<256x128xbf16, #tpu.memory_space<vmem>>, vector<256x128xbf16>
    %cst = arith.constant dense<0.000000e+00> : vector<8x128xf32>
    %2 = tpu.matmul %0, %1, %cst {dimension_numbers = #tpu.dot_dimension_numbers<[1], [0], [0], [1], [0, 0, 1, 1], [], []>} : vector<8x256xbf16>, vector<256x128xbf16>, vector<8x128xf32> -> vector<8x128xf32>
    %c0_3 = arith.constant 0 : index
    %c0_4 = arith.constant 0 : index
    %3 = vector.load %arg3[%c0_3, %c0_4] : memref<1x128xf32, #tpu.memory_space<vmem>>, vector<1x128xf32>
    %4 = vector.broadcast %3 : vector<1x128xf32> to vector<8x128xf32>
    %5 = arith.addf %2, %4 : vector<8x128xf32>
    %cst_5 = arith.constant 0.000000e+00 : f32
    %6 = vector.broadcast %cst_5 : f32 to vector<8x128xf32>
    %7 = arith.maximumf %5, %6 : vector<8x128xf32>
    %8 = arith.truncf %7 : vector<8x128xf32> to vector<8x128xbf16>
    %c0_6 = arith.constant 0 : index
    %c0_7 = arith.constant 0 : index
    %9 = vector.load %arg4[%c0_6, %c0_7] : memref<128x128xbf16, #tpu.memory_space<vmem>>, vector<128x128xbf16>
    %cst_8 = arith.constant dense<0.000000e+00> : vector<8x128xf32>
    %10 = tpu.matmul %8, %9, %cst_8 {dimension_numbers = #tpu.dot_dimension_numbers<[1], [0], [0], [1], [0, 0, 1, 1], [], []>} : vector<8x128xbf16>, vector<128x128xbf16>, vector<8x128xf32> -> vector<8x128xf32>
    %c0_9 = arith.constant 0 : index
    %c0_10 = arith.constant 0 : index
    %11 = vector.load %arg5[%c0_9, %c0_10] : memref<1x128xf32, #tpu.memory_space<vmem>>, vector<1x128xf32>
    %12 = vector.broadcast %11 : vector<1x128xf32> to vector<8x128xf32>
    %13 = arith.addf %10, %12 : vector<8x128xf32>
    %cst_11 = arith.constant 0.000000e+00 : f32
    %14 = vector.broadcast %cst_11 : f32 to vector<8x128xf32>
    %15 = arith.maximumf %13, %14 : vector<8x128xf32>
    %16 = arith.truncf %15 : vector<8x128xf32> to vector<8x128xbf16>
    %c0_12 = arith.constant 0 : index
    %c0_13 = arith.constant 0 : index
    %17 = vector.load %arg6[%c0_12, %c0_13] : memref<128x256xbf16, #tpu.memory_space<vmem>>, vector<128x256xbf16>
    %cst_14 = arith.constant dense<0.000000e+00> : vector<8x256xf32>
    %18 = tpu.matmul %16, %17, %cst_14 {dimension_numbers = #tpu.dot_dimension_numbers<[1], [0], [0], [1], [0, 0, 1, 1], [], []>} : vector<8x128xbf16>, vector<128x256xbf16>, vector<8x256xf32> -> vector<8x256xf32>
    %c0_15 = arith.constant 0 : index
    %c0_16 = arith.constant 0 : index
    %19 = vector.load %arg7[%c0_15, %c0_16] : memref<1x256xf32, #tpu.memory_space<vmem>>, vector<1x256xf32>
    %20 = vector.broadcast %19 : vector<1x256xf32> to vector<8x256xf32>
    %21 = arith.addf %18, %20 : vector<8x256xf32>
    %22 = vector.extract_strided_slice %21 {offsets = [0, 0], sizes = [8, 128], strides = [1, 1]} : vector<8x256xf32> to vector<8x128xf32>
    %c0_17 = arith.constant 0 : index
    %c0_18 = arith.constant 0 : index
    %23 = vector.load %arg8[%c0_17, %c0_18] : memref<8x128xf32, #tpu.memory_space<vmem>>, vector<8x128xf32>
    tpu.vector_store %arg8[%c0_17, %c0_18], %22 {strides = array<i32>} : memref<8x128xf32, #tpu.memory_space<vmem>>, vector<8x128xf32>,
    %24 = vector.extract_strided_slice %21 {offsets = [0, 128], sizes = [8, 128], strides = [1, 1]} : vector<8x256xf32> to vector<8x128xf32>
    %25 = math.exp %24 : vector<8x128xf32>
    %c0_19 = arith.constant 0 : index
    %c0_20 = arith.constant 0 : index
    %26 = vector.load %arg9[%c0_19, %c0_20] : memref<8x128xf32, #tpu.memory_space<vmem>>, vector<8x128xf32>
    tpu.vector_store %arg9[%c0_19, %c0_20], %25 {strides = array<i32>} : memref<8x128xf32, #tpu.memory_space<vmem>>, vector<8x128xf32>,
    return
  }
  func.func @transform_0(%arg0: i32) -> (i32, i32) {
    %c0_i32 = arith.constant 0 : i32
    %c0_i32_0 = arith.constant 0 : i32
    return %arg0, %c0_i32 : i32, i32
  }
  func.func @transform_1(%arg0: i32) -> (i32, i32) {
    %c0_i32 = arith.constant 0 : i32
    %c0_i32_0 = arith.constant 0 : i32
    %c0_i32_1 = arith.constant 0 : i32
    return %c0_i32, %c0_i32_0 : i32, i32
  }
  func.func @transform_2(%arg0: i32) -> (i32, i32) {
    %c0_i32 = arith.constant 0 : i32
    %c0_i32_0 = arith.constant 0 : i32
    %c0_i32_1 = arith.constant 0 : i32
    return %c0_i32, %c0_i32_0 : i32, i32
  }
  func.func @transform_3(%arg0: i32) -> (i32, i32) {
    %c0_i32 = arith.constant 0 : i32
    %c0_i32_0 = arith.constant 0 : i32
    %c0_i32_1 = arith.constant 0 : i32
    return %c0_i32, %c0_i32_0 : i32, i32
  }
  func.func @transform_4(%arg0: i32) -> (i32, i32) {
    %c0_i32 = arith.constant 0 : i32
    %c0_i32_0 = arith.constant 0 : i32
    %c0_i32_1 = arith.constant 0 : i32
    return %c0_i32, %c0_i32_0 : i32, i32
  }
  func.func @transform_5(%arg0: i32) -> (i32, i32) {
    %c0_i32 = arith.constant 0 : i32
    %c0_i32_0 = arith.constant 0 : i32
    %c0_i32_1 = arith.constant 0 : i32
    return %c0_i32, %c0_i32_0 : i32, i32
  }
  func.func @transform_6(%arg0: i32) -> (i32, i32) {
    %c0_i32 = arith.constant 0 : i32
    %c0_i32_0 = arith.constant 0 : i32
    %c0_i32_1 = arith.constant 0 : i32
    return %c0_i32, %c0_i32_0 : i32, i32
  }
  func.func @transform_7(%arg0: i32) -> (i32, i32) {
    %c0_i32 = arith.constant 0 : i32
    %c0_i32_0 = arith.constant 0 : i32
    return %arg0, %c0_i32 : i32, i32
  }
  func.func @transform_8(%arg0: i32) -> (i32, i32) {
    %c0_i32 = arith.constant 0 : i32
    %c0_i32_0 = arith.constant 0 : i32
    return %arg0, %c0_i32 : i32, i32
  }
}

</mosaic_0001>

<bundles_post_ra>
// kernel: tpu_custom_call.1
= control target key start
LH: loop header
LB: loop body
LE: loop exit
PB: predicated region body
PF: predicated region fallthrough
CT: control target
= control target key end

     0   :  { %14 = vsyncpa [#allocation3], 0  ;;  %s1022_s0 = inlined_call_operand.hbm [shape: bf16[8,256], index: 0, kind: input, shape index: {}]   ;;  %s1023_s1 = inlined_call_operand.hbm [shape: bf16[256,128], index: 1, kind: input, shape index: {}]   ;;  %s1024_s2 = inlined_call_operand.vmem [shape: f32[1,128], index: 2, kind: input, shape index: {}]   ;;  %s1025_s3 = inlined_call_operand.hbm [shape: bf16[128,128], index: 3, kind: input, shape index: {}]   ;;  %s1026_s4 = inlined_call_operand.vmem [shape: f32[1,128], index: 4, kind: input, shape index: {}]   ;;  %s1027_s5 = inlined_call_operand.hbm [shape: bf16[128,256], index: 5, kind: input, shape index: {}]   ;;  %s1028_s6 = inlined_call_operand.vmem [shape: f32[1,256], index: 6, kind: input, shape index: {}]   ;;  %s1029_s7 = inlined_call_operand.hbm [shape: f32[8,128], index: 7, kind: output, shape index: {0}]   ;;  %s1030_s8 = inlined_call_operand.hbm [shape: f32[8,128], index: 8, kind: output, shape index: {1}]  }
   0x1   :  { %15 = vsyncpa [#allocation6], 0 }
   0x2   :  { %16 = vsyncpa [#allocation9], 0 }
   0x3   :  { %17 = vsyncpa [#allocation4], 0 }
   0x4   :  { %18 = vsyncpa [#allocation12], 0  ;;  %s868_s27 = smov [#allocation5]   ;;  %s726_s9 = scalar_lea.hbm %s1023_s1, 2048 }
   0x5   :  { %s34_s28 = sshll.u32 %s868_s27, 4  ;;  %p727_p0 = scmp.ne.s32.totalorder %s1023_s1, %s726_s9  ;;  %s35_s28 = int_to_ptr.vmem [resolvable:$true] %s34_s28 }
   0x6   :  { %p730_p1 = scmp.lt.u32.totalorder %s726_s9, %s1023_s1 }
   0x8   :  { %p732_p2 = pnand %p730_p1, %p727_p0 }
   0xa   :  { %735 = shalt.err (!%p732_p2)
}
   0xb   :  { %s736_s14 = scalar_lea.vmem %s35_s28, 2048  ;;  %p741_p4 = scmp.lt.s32.totalorder %s35_s28, %s35_s28 }
   0xc   :  { %p737_p3 = scmp.ne.s32.totalorder %s35_s28, %s736_s14  ;;  %p742_p5 = scmp.lt.s32.totalorder %s736_s14, %s736_s14 }
   0xe   :  { %p743_p6 = por %p742_p5, %p741_p4 }
  0x10   :  { %p744_p7 = pnand %p743_p6, %p737_p3 }
  0x12   :  { %747 = shalt.err (!%p744_p7)
}
  0x13   :  { %s869_s15 = smov 64   ;;  %s870_s16 = smov 4  }
  0x14   :  { %40 = dma.hbm_to_vmem [thread:$0]  %s1023_s1, 2048, %s35_s28, [#allocation6], %s869_s15, %s869_s15, %s870_s16  }
  0x15   :  { %s871_s19 = smov [#allocation2]   ;;  %s872_s21 = smov [#allocation7]  }
  0x16   :  { %s25_s20 = sshll.u32 %s871_s19, 4  ;;  %s48_s22 = sshll.u32 %s872_s21, 4  ;;  %s26_s20 = int_to_ptr.vmem [resolvable:$true] %s25_s20  ;;  %s49_s22 = int_to_ptr.vmem [resolvable:$true] %s48_s22 }
  0x17   :  { %s748_s25 = scalar_lea.hbm %s1022_s0, 128 }
  0x18   :  { %p749_p8 = scmp.ne.s32.totalorder %s1022_s0, %s748_s25  ;;  %p752_p9 = scmp.lt.u32.totalorder %s748_s25, %s1022_s0 }
  0x1a   :  { %p754_p10 = pnand %p752_p9, %p749_p8 }
  0x1c   :  { %757 = shalt.err (!%p754_p10)
}
  0x1d   :  { %s758_s1 = scalar_lea.vmem %s26_s20, 128  ;;  %p763_p12 = scmp.lt.s32.totalorder %s26_s20, %s26_s20 }
  0x1e   :  { %p759_p11 = scmp.ne.s32.totalorder %s26_s20, %s758_s1  ;;  %p764_p13 = scmp.lt.s32.totalorder %s758_s1, %s758_s1 }
  0x20   :  { %p765_p0 = por %p764_p13, %p763_p12 }
  0x22   :  { %p766_p1 = pnand %p765_p0, %p759_p11 }
  0x24   :  { %769 = shalt.err (!%p766_p1)
}
  0x25   :  { %28 = dma.hbm_to_vmem [thread:$0]  %s1022_s0, 128, %s26_s20, [#allocation3]  }
  0x26   :  { %s770_s12 = scalar_lea.hbm %s1025_s3, 1024 }
  0x27   :  { %p771_p2 = scmp.ne.s32.totalorder %s1025_s3, %s770_s12  ;;  %p774_p3 = scmp.lt.u32.totalorder %s770_s12, %s1025_s3 }
  0x29   :  { %p776_p4 = pnand %p774_p3, %p771_p2 }
  0x2b   :  { %779 = shalt.err (!%p776_p4)
}
  0x2c   :  { %s780_s19 = scalar_lea.vmem %s49_s22, 1024  ;;  %p785_p6 = scmp.lt.s32.totalorder %s49_s22, %s49_s22 }
  0x2d   :  { %p781_p5 = scmp.ne.s32.totalorder %s49_s22, %s780_s19  ;;  %p786_p7 = scmp.lt.s32.totalorder %s780_s19, %s780_s19 }
  0x2f   :  { %p787_p8 = por %p786_p7, %p785_p6 }
  0x31   :  { %p788_p9 = pnand %p787_p8, %p781_p5 }
  0x33   :  { %791 = shalt.err (!%p788_p9)
}
  0x34   :  { %54 = dma.hbm_to_vmem [thread:$0]  %s1025_s3, 1024, %s49_s22, [#allocation6], %s869_s15, %s869_s15, %s870_s16  }
  0x35   :  { %s873_s21 = smov [#allocation8]   ;;  %s792_s26 = scalar_lea.hbm %s1027_s5, 2048 }
  0x36   :  { %s62_s23 = sshll.u32 %s873_s21, 4  ;;  %p793_p10 = scmp.ne.s32.totalorder %s1027_s5, %s792_s26  ;;  %s63_s23 = int_to_ptr.vmem [resolvable:$true] %s62_s23 }
  0x37   :  { %p796_p11 = scmp.lt.u32.totalorder %s792_s26, %s1027_s5 }
  0x39   :  { %p798_p12 = pnand %p796_p11, %p793_p10 }
  0x3b   :  { %801 = shalt.err (!%p798_p12)
}
  0x3c   :  { %s802_s28 = scalar_lea.vmem %s63_s23, 2048  ;;  %p807_p0 = scmp.lt.s32.totalorder %s63_s23, %s63_s23 }
  0x3d   :  { %p803_p13 = scmp.ne.s32.totalorder %s63_s23, %s802_s28  ;;  %p808_p1 = scmp.lt.s32.totalorder %s802_s28, %s802_s28 }
  0x3f   :  { %p809_p2 = por %p808_p1, %p807_p0 }
  0x41   :  { %p810_p3 = pnand %p809_p2, %p803_p13 }
  0x43   :  { %813 = shalt.err (!%p810_p3)
}
  0x44   :  { %s874_s3 = smov 128   ;;  %s875_s15 = smov 8  }
  0x45   :  { %68 = dma.hbm_to_vmem [thread:$0]  %s1027_s5, 2048, %s63_s23, [#allocation9], %s874_s3, %s874_s3, %s875_s15  }
  0x46   :  { %858 = dma.done.wait [#allocation3], 128  }
  0x47   :  { %859 = vsyncadd [#allocation3], 4294967168 }
  0x48   :  { %860 = dma.done.wait [#allocation6], 3072  }
  0x49   :  { %861 = vsyncadd [#allocation6], 4294964224 }
  0x4a   :  { %862 = dma.done.wait [#allocation9], 2048  }
  0x4b   :  { %863 = vsyncadd [#allocation9], 4294965248  ;;  %v876_v0 = vmov 0.0   ;;  %v674_v1 = vld [vmem:[#allocation5 + $0x40] sm:$0xff]   ;;  %v676_v3 = vld [vmem:[#allocation5 + $0x48] sm:$0xff]   ;;  %vm877_vm0 = vmmov 0   ;;  %v400_v62 = vlaneseq }
  0x4c   :  { %641 = vmatprep.subr.bf16.mxu1 %v876_v0  ;;  %v675_v2 = vld [vmem:[#allocation5] sm:$0xff]   ;;  %610 = vmatprep.subr.bf16.mxu0 %v674_v1  ;;  %v677_v4 = vld [vmem:[#allocation5 + $0x8] sm:$0xff]   ;;  %v678_v5 = vld [vmem:[#allocation5 + $0x50] sm:$0xff]   ;;  %v878_v53 = vmov 0   ;;  %s879_s13 = smov [#allocation10]  }
  0x4d   :  { %611 = vmatpush3.bf16.msra.mxu0 %v675_v2  ;;  %v679_v6 = vld [vmem:[#allocation5 + $0x10] sm:$0xff]   ;;  %v680_v7 = vld [vmem:[#allocation5 + $0x58] sm:$0xff]   ;;  %v682_v9 = vld [vmem:[#allocation5 + $0x60] sm:$0xff]   ;;  %657 = vmatprep.mubr.msk.bf16.mxu1 %vm877_vm0, %v876_v0  ;;  %v401_v63 = vshrl.u32 %v400_v62, 7 }
  0x4e   :  { %612 = vmatprep.subr.bf16.mxu0 %v676_v3  ;;  %v681_v8 = vld [vmem:[#allocation5 + $0x18] sm:$0xff]   ;;  %v683_v10 = vld [vmem:[#allocation5 + $0x20] sm:$0xff]   ;;  %v684_v11 = vld [vmem:[#allocation5 + $0x68] sm:$0xff]  }
  0x4f   :  { %v84_v12 = vld [vmem:[#allocation2] sm:$0xff]  ;;  %v692_v14 = vld [vmem:[#allocation7] sm:$0xff]   ;;  %v685_v15 = vld [vmem:[#allocation5 + $0x28] sm:$0xff]   ;;  %v406_v2 = vsub.s32 1, %v401_v63 }
  0x50   :  { %v568_v13 = vcombine.high %v84_v12, %v84_v12  ;;  %v686_v16 = vld [vmem:[#allocation5 + $0x70] sm:$0xff]   ;;  %642 = vmatpush3.bf16.msra.mxu1 %v692_v14  ;;  %v693_v17 = vld [vmem:[#allocation7 + $0x8] sm:$0xff]   ;;  %v688_v19 = vld [vmem:[#allocation5 + $0x78] sm:$0xff]   ;;  %v567_v23 = vcombine.low %v84_v12, %v84_v12 }
  0x51   :  { %613 = vmatpush3.bf16.msra.mxu0 %v677_v4  ;;  %v687_v18 = vld [vmem:[#allocation5 + $0x30] sm:$0xff]   ;;  %643 = vmatprep.subr.bf16.mxu1 %v876_v0  ;;  %v689_v21 = vld [vmem:[#allocation5 + $0x38] sm:$0xff]   ;;  %v696_v24 = vld [vmem:[#allocation7 + $0x20] sm:$0xff]  }
  0x52   :  { %614 = vmatprep.subr.bf16.mxu0 %v678_v5  ;;  %259 = vmatprep.mubr.bf16.mxu0 %v568_v13  ;;  %v694_v20 = vld [vmem:[#allocation7 + $0x10] sm:$0xff]   ;;  %v695_v22 = vld [vmem:[#allocation7 + $0x18] sm:$0xff]   ;;  %v697_v25 = vld [vmem:[#allocation7 + $0x28] sm:$0xff]  }
  0x53   :  { %v698_v26 = vld [vmem:[#allocation7 + $0x30] sm:$0xff]   ;;  %v699_v27 = vld [vmem:[#allocation7 + $0x38] sm:$0xff]   ;;  %v700_v28 = vld [vmem:[#allocation8] ss:$8 sps:$4 sm:$0xff]  }
  0x54   :  { %644 = vmatpush3.bf16.msra.mxu1 %v693_v17  ;;  %v702_v29 = vld [vmem:[#allocation8 + $0x4] ss:$8 sps:$4 sm:$0xff]   ;;  %v705_v30 = vld [vmem:[#allocation8 + $0x14] ss:$8 sps:$4 sm:$0xff]   ;;  %v703_v31 = vld [vmem:[#allocation8 + $0x10] ss:$8 sps:$4 sm:$0xff]  }
  0x55   :  { %615 = vmatpush3.bf16.msra.mxu0 %v679_v6  ;;  %645 = vmatprep.subr.bf16.mxu1 %v876_v0  ;;  %v708_v32 = vld [vmem:[#allocation8 + $0x24] ss:$8 sps:$4 sm:$0xff]   ;;  %v706_v33 = vld [vmem:[#allocation8 + $0x20] ss:$8 sps:$4 sm:$0xff]   ;;  %v711_v34 = vld [vmem:[#allocation8 + $0x34] ss:$8 sps:$4 sm:$0xff]  }
  0x56   :  { %616 = vmatprep.subr.bf16.mxu0 %v680_v7  ;;  %v709_v35 = vld [vmem:[#allocation8 + $0x30] ss:$8 sps:$4 sm:$0xff]   ;;  %v714_v36 = vld [vmem:[#allocation8 + $0x44] ss:$8 sps:$4 sm:$0xff]   ;;  %v712_v37 = vld [vmem:[#allocation8 + $0x40] ss:$8 sps:$4 sm:$0xff]  }
  0x57   :  { %v717_v38 = vld [vmem:[#allocation8 + $0x54] ss:$8 sps:$4 sm:$0xff]   ;;  %v715_v39 = vld [vmem:[#allocation8 + $0x50] ss:$8 sps:$4 sm:$0xff]   ;;  %v720_v40 = vld [vmem:[#allocation8 + $0x64] ss:$8 sps:$4 sm:$0xff]  }
  0x58   :  { %646 = vmatpush3.bf16.msra.mxu1 %v694_v20  ;;  %v718_v41 = vld [vmem:[#allocation8 + $0x60] ss:$8 sps:$4 sm:$0xff]   ;;  %v566_v43 = vld [vmem:[%s1024_s2] ss:$0 sm:$0xff]  ;;  %v723_v51 = vld [vmem:[#allocation8 + $0x74] ss:$8 sps:$4 sm:$0xff]  }
  0x59   :  { %617 = vmatpush3.bf16.msra.mxu0 %v681_v8  ;;  %647 = vmatprep.subr.bf16.mxu1 %v876_v0  ;;  %v721_v52 = vld [vmem:[#allocation8 + $0x70] ss:$8 sps:$4 sm:$0xff]  }
  0x5a   :  { %618 = vmatprep.subr.bf16.mxu0 %v682_v9  ;;  %v585_v54 = vld [vmem:[%s1026_s4] ss:$0 sm:$0xff]  ;;  %s541_s4 = sshll.u32 %s879_s13, 4  ;;  %s542_s4 = int_to_ptr.vmem [resolvable:$true] %s541_s4 }
  0x5b   :  { %v398_v1 = vld [vmem:[%s1028_s6] sm:$0x3]  ;;  %s814_s14 = scalar_lea.vmem %s542_s4, 128  ;;  %p819_p5 = scmp.lt.s32.totalorder %s542_s4, %s542_s4 }
  0x5c   :  { %648 = vmatpush3.bf16.msra.mxu1 %v695_v22  ;;  %v407_v4 = vrot.slane %v398_v1, %v406_v2  ;;  %p815_p4 = scmp.ne.s32.totalorder %s542_s4, %s814_s14  ;;  %p820_p6 = scmp.lt.s32.totalorder %s814_s14, %s814_s14 }
  0x5d   :  { %619 = vmatpush3.bf16.msra.mxu0 %v683_v10  ;;  %649 = vmatprep.subr.bf16.mxu1 %v876_v0 }
  0x5e   :  { %620 = vmatprep.subr.bf16.mxu0 %v684_v11  ;;  %p821_p7 = por %p820_p6, %p819_p5 }
  0x60   :  { %650 = vmatpush3.bf16.msra.mxu1 %v696_v24  ;;  %p822_p8 = pnand %p821_p7, %p815_p4 }
  0x61   :  { %621 = vmatpush3.bf16.msra.mxu0 %v685_v15  ;;  %651 = vmatprep.subr.bf16.mxu1 %v876_v0 }
  0x62   :  { %622 = vmatprep.subr.bf16.mxu0 %v686_v16 }
  0x64   :  { %652 = vmatpush3.bf16.msra.mxu1 %v697_v25 }
  0x65   :  { %623 = vmatpush3.bf16.msra.mxu0 %v687_v18  ;;  %653 = vmatprep.subr.bf16.mxu1 %v876_v0 }
  0x66   :  { %624 = vmatprep.subr.bf16.mxu0 %v688_v19 }
  0x68   :  { %654 = vmatpush3.bf16.msra.mxu1 %v698_v26 }
  0x69   :  { %625 = vmatpush3.bf16.msra.mxu0 %v689_v21  ;;  %655 = vmatprep.subr.bf16.mxu1 %v876_v0  ;;  %v402_v0 = vsub.s32 0, %v401_v63 }
  0x6a   :  { %490 = vmatprep.subr.bf16.mxu0 %v702_v29 }
  0x6b   :  { %v403_v3 = vrot.slane %v398_v1, %v402_v0 }
  0x6c   :  { %260 = vmatmul.mubr.bf16.vlgmr.msra.gmra.mrb[0].mxu0 %v567_v23  ;;  %656 = vmatpush3.bf16.msra.mxu1 %v699_v27 }
  0x6d   :  { %491 = vmatpush1.bf16.msra.mxu0 %v700_v28  ;;  %522 = vmatprep.mubr.bf16.mxu0 %v878_v53 }
  0x6e   :  { %492 = vmatprep.subr.bf16.mxu0 %v705_v30 }
  0x71   :  { %493 = vmatpush1.bf16.msra.mxu0 %v703_v31 }
  0x72   :  { %494 = vmatprep.subr.bf16.mxu0 %v708_v32 }
  0x75   :  { %495 = vmatpush1.bf16.msra.mxu0 %v706_v33 }
  0x76   :  { %496 = vmatprep.subr.bf16.mxu0 %v711_v34 }
  0x79   :  { %497 = vmatpush1.bf16.msra.mxu0 %v709_v35 }
  0x7a   :  { %498 = vmatprep.subr.bf16.mxu0 %v714_v36 }
  0x7d   :  { %499 = vmatpush1.bf16.msra.mxu0 %v712_v37 }
  0x7e   :  { %500 = vmatprep.subr.bf16.mxu0 %v717_v38 }
  0x81   :  { %501 = vmatpush1.bf16.msra.mxu0 %v715_v39 }
  0x82   :  { %502 = vmatprep.subr.bf16.mxu0 %v720_v40 }
  0x85   :  { %503 = vmatpush1.bf16.msra.mxu0 %v718_v41 }
  0x86   :  { %504 = vmatprep.subr.bf16.mxu0 %v723_v51 }
  0x89   :  { %505 = vmatpush1.bf16.msra.mxu0 %v721_v52 }
 0x13f   :  { %v626_v42 = vpop.f32.mrb[0].mxu0 }
 0x140   :  { %v627_v44 = vpop.f32.mrb[1].mxu0 }
 0x141   :  { %v628_v45 = vadd.f32 %v627_v44, %v626_v42  ;;  %v629_v46 = vpop.f32.mrb[2].mxu0 }
 0x142   :  { %v630_v47 = vpop.f32.mrb[3].mxu0 }
 0x143   :  { %v262_v48 = vadd.f32 %v628_v45, %v566_v43 }
 0x145   :  { %v267_v49 = vmax.f32 %v262_v48, 0.0 }
 0x147   :  { %v268_v50 = vpack.c.bf16 %v267_v49, %v267_v49 }
 0x149   :  { %658 = vmatmul.mubr.bf16.vlgmr.msra.gmra.mrb[0].mxu1 %v268_v50 }
 0x21c   :  { %v374_v55 = vpop.f32.mrb[0].mxu1 }
 0x21d   :  { %v375_v56 = vadd.f32 %v585_v54, %v374_v55  ;;  %v659_v57 = vpop.f32.mrb[1].mxu1 }
 0x21e   :  { %v377_v58 = vpop.f32.mrb[2].mxu1 }
 0x21f   :  { %v380_v59 = vmax.f32 %v375_v56, 0.0  ;;  %v660_v60 = vpop.f32.mrb[3].mxu1 }
 0x221   :  { %v381_v61 = vpack.c.bf16 %v380_v59, %v380_v59 }
 0x223   :  { %523 = vmatmul.mubr.bf16.vlgmr.msra.gmra.mrb[4].mxu0 %v381_v61 }
 0x2f6   :  { %v524_v5 = vpop.f32.mrb[4].mxu0 }
 0x2f7   :  { %v525_v6 = vadd.f32 %v524_v5, %v403_v3  ;;  %v526_v7 = vpop.f32.mrb[5].mxu0 }
 0x2f8   :  { %v527_v8 = vadd.f32 %v526_v7, %v407_v4  ;;  %v528_v9 = vpop.f32.mrb[6].mxu0 }
 0x2f9   :  { %531 = vst [vmem:[#allocation10] sm:$0xff] %v525_v6  ;;  %v529_v10 = vpop.f32.mrb[7].mxu0 }
 0x2fa   :  { %v532_v11 = vmul.f32 1.442695, %v527_v8 }
 0x2fb   :  { %825 = shalt.err (!%p822_p8)
}
 0x2fc   :  { %s826_s18 = scalar_lea.hbm %s1029_s7, 128 }
 0x2fd   :  { %p827_p9 = scmp.ne.s32.totalorder %s1029_s7, %s826_s18  ;;  %p830_p10 = scmp.lt.u32.totalorder %s826_s18, %s1029_s7 }
 0x2ff   :  { %p832_p11 = pnand %p830_p10, %p827_p9 }
 0x301   :  { %835 = shalt.err (!%p832_p11)
}
 0x302   :  { %544 = dma.vmem_to_hbm [thread:$0]  %s542_s4, 128, %s1029_s7, [#allocation4]   ;;  %724 = vpow2.f32 %v532_v11 }
 0x303   :  { %s880_s25 = smov [#allocation11]  }
 0x304   :  { %s551_s26 = sshll.u32 %s880_s25, 4  ;;  %s552_s26 = int_to_ptr.vmem [resolvable:$true] %s551_s26 }
 0x305   :  { %s836_s27 = scalar_lea.vmem %s552_s26, 128  ;;  %p841_p13 = scmp.lt.s32.totalorder %s552_s26, %s552_s26 }
 0x306   :  { %p837_p12 = scmp.ne.s32.totalorder %s552_s26, %s836_s27  ;;  %p842_p0 = scmp.lt.s32.totalorder %s836_s27, %s836_s27 }
 0x308   :  { %p843_p1 = por %p842_p0, %p841_p13 }
 0x30a   :  { %p844_p2 = pnand %p843_p1, %p837_p12 }
 0x30c   :  { %v725_v12 = vpop.eup %724 }
 0x30d   :  { %534 = vst [vmem:[#allocation11] sm:$0xff] %v725_v12 }
 0x30e   :  { %847 = shalt.err (!%p844_p2)
}
 0x30f   :  { %s848_s1 = scalar_lea.hbm %s1030_s8, 128 }
 0x310   :  { %p849_p3 = scmp.ne.s32.totalorder %s1030_s8, %s848_s1  ;;  %p852_p4 = scmp.lt.u32.totalorder %s848_s1, %s1030_s8 }
 0x312   :  { %p854_p5 = pnand %p852_p4, %p849_p3 }
 0x314   :  { %857 = shalt.err (!%p854_p5)
}
 0x315   :  { %554 = dma.vmem_to_hbm [thread:$0]  %s552_s26, 128, %s1030_s8, [#allocation12]  }
 0x316   :  { %864 = dma.done.wait [#allocation4], 128  }
 0x317   :  { %865 = vsyncadd [#allocation4], 4294967168 }
 0x318   :  { %866 = dma.done.wait [#allocation12], 128  }
 0x319   :  { %867 = vsyncadd [#allocation12], 4294967168 }
 0x31a   :  { %561 = vsyncpa [#allocation3], 1 }
 0x31b   :  { %562 = vsyncpa [#allocation6], 1 }
 0x31c   :  { %563 = vsyncpa [#allocation9], 1 }
 0x31d   :  { %564 = vsyncpa [#allocation4], 1 }
 0x31e   :  { %565 = vsyncpa [#allocation12], 1 }

</bundles_post_ra>
